<compile_context>
chip_gen: v5e
topology: v5e:2x2
jax: 0.10.0
libtpu: 0.0.40
codegen_flags: <defaults>
</compile_context>

<pallas_src>
import jax
import jax.numpy as jnp
from jax.experimental import pallas as pl
from jax.experimental.pallas import tpu as pltpu


def _cube_kernel(x_ref, o_ref):
    x = x_ref[...]
    o_ref[...] = x * x * x  # pow(x, 3), exact elementwise semantics


def cube(x):
    """Elementwise cube of an arbitrary-shaped array via a Pallas TPU kernel."""
    orig_shape = x.shape
    orig_dtype = x.dtype
    itemsize = jnp.dtype(orig_dtype).itemsize

    flat = x.reshape(-1)
    n = flat.shape[0]

    # Pick the widest lane-dense last dim (multiple of 128) that divides n, so
    # no pad/concatenate (extra HBM pass) is needed in the common case.
    lane = 0
    for cand in (2048, 1024, 512, 256, 128):
        if n % cand == 0:
            lane = cand
            break

    padded = False
    if lane == 0:
        # Rare path: n not a multiple of 128 -> pad only the small tail.
        lane = 128
        pad = (-n) % lane
        flat = jnp.concatenate([flat, jnp.zeros((pad,), dtype=orig_dtype)])
        padded = True

    rows = flat.shape[0] // lane
    slab = flat.reshape(rows, lane)

    # Tile rows so each block is ~1 MiB (safe for double-buffered in+out on
    # v5e's 16 MiB scoped VMEM; well under v6e/v7x limits), clamped to the
    # problem size so small inputs are not blown up.
    target_bytes = 1 << 20  # ~1 MiB per block per buffer
    tile_rows = max(8, target_bytes // (lane * itemsize))
    tile_rows = (tile_rows // 8) * 8  # keep sublane dim a multiple of 8
    if tile_rows >= rows:
        tile_rows = rows  # single block: block dim == full array dim is allowed

    grid = (pl.cdiv(rows, tile_rows),)

    cost = pl.CostEstimate(
        flops=2 * n,                      # two multiplies per element
        transcendentals=0,
        bytes_accessed=2 * n * itemsize,  # one read + one write pass
    )

    out = pl.pallas_call(
        _cube_kernel,
        out_shape=jax.ShapeDtypeStruct((rows, lane), orig_dtype),
        grid=grid,
        in_specs=[pl.BlockSpec((tile_rows, lane), lambda i: (i, 0))],
        out_specs=pl.BlockSpec((tile_rows, lane), lambda i: (i, 0)),
        compiler_params=pltpu.CompilerParams(
            dimension_semantics=("parallel",),
        ),
        cost_estimate=cost,
    )(slab)

    out_flat = out.reshape(-1)
    if padded:
        out_flat = out_flat[:n]
    return out_flat.reshape(orig_shape)


if __name__ == "__main__":
    key = jax.random.PRNGKey(0)
    # Small NCHW input consistent with a conv-style module interface.
    x = jax.random.normal(key, (2, 4, 16, 16), dtype=jnp.float32)

    y = cube(x)
    y = jax.block_until_ready(y)

    # Correctness check against plain JAX reference.
    ref = x ** 3
    assert y.shape == x.shape
    assert y.dtype == x.dtype
    assert jnp.allclose(y, ref, atol=1e-6, rtol=1e-6)

    print("KERNEL_OK")
</pallas_src>

<mosaic_0001>
module attributes {stable_mosaic.version = 11 : i64} {
  func.func @_cube_kernel(%arg0: i32, %arg1: memref<1x2048xf32, #tpu.memory_space<vmem>>, %arg2: memref<1x2048xf32, #tpu.memory_space<vmem>>) attributes {dimension_semantics = [#tpu.dimension_semantics<parallel>], iteration_bounds = array<i64: 1>, scalar_prefetch = 0 : i64, scratch_operands = 0 : i64, tpu.core_type = #tpu.core_type<tc>, window_params = [{transform_indices = @transform_0, window_bounds = array<i64: 1, 2048>}, {transform_indices = @transform_1, window_bounds = array<i64: 1, 2048>}]} {
    %c0 = arith.constant 0 : index
    %c0_0 = arith.constant 0 : index
    %0 = vector.load %arg1[%c0, %c0_0] : memref<1x2048xf32, #tpu.memory_space<vmem>>, vector<1x2048xf32>
    %1 = arith.mulf %0, %0 : vector<1x2048xf32>
    %2 = arith.mulf %1, %0 : vector<1x2048xf32>
    %c0_1 = arith.constant 0 : index
    %c0_2 = arith.constant 0 : index
    %3 = vector.load %arg2[%c0_1, %c0_2] : memref<1x2048xf32, #tpu.memory_space<vmem>>, vector<1x2048xf32>
    tpu.vector_store %arg2[%c0_1, %c0_2], %2 {strides = array<i32>} : memref<1x2048xf32, #tpu.memory_space<vmem>>, vector<1x2048xf32>,
    return
  }
  func.func @transform_0(%arg0: i32) -> (i32, i32) {
    %c0_i32 = arith.constant 0 : i32
    %c0_i32_0 = arith.constant 0 : i32
    return %arg0, %c0_i32 : i32, i32
  }
  func.func @transform_1(%arg0: i32) -> (i32, i32) {
    %c0_i32 = arith.constant 0 : i32
    %c0_i32_0 = arith.constant 0 : i32
    return %arg0, %c0_i32 : i32, i32
  }
}

</mosaic_0001>

<bundles_post_ra>
// kernel: tpu_custom_call.1
= control target key start
LH: loop header
LB: loop body
LE: loop exit
PB: predicated region body
PF: predicated region fallthrough
CT: control target
= control target key end

     0   :  { %6 = vsyncpa [#allocation3], 0  ;;  %s120_s0 = inlined_call_operand.hbm [shape: f32[1,2048], index: 0, kind: input, shape index: {}]   ;;  %s121_s1 = inlined_call_operand.hbm [shape: f32[1,2048], index: 1, kind: output, shape index: {}]  }
   0x1   :  { %7 = vsyncpa [#allocation4], 0  ;;  %s13_s8 = sshll.u32 %s120_s0, 4  ;;  %s102_s9 = smov [#allocation2]   ;;  %s14_s8 = int_to_ptr.hbm [resolvable:$true] %s13_s8 }
   0x2   :  { %s15_s10 = sshll.u32 %s102_s9, 4  ;;  %s16_s10 = int_to_ptr.vmem [resolvable:$true] %s15_s10 }
   0x3   :  { %18 = dma.hbm_to_vmem [thread:$0]  %s14_s8, 256, %s16_s10, [#allocation3]  }
   0x4   :  { %98 = dma.done.wait [#allocation3], 256  }
   0x5   :  { %99 = vsyncadd [#allocation3], 4294967040  ;;  %v23_v0 = vld [vmem:[#allocation2] sm:$0xff]  ;;  %v24_v1 = vld [vmem:[#allocation2 + $0x8] sm:$0xff]  ;;  %s103_s11 = smov [#allocation5]   ;;  %s38_s15 = sshll.u32 %s121_s1, 4  ;;  %s39_s15 = int_to_ptr.hbm [resolvable:$true] %s38_s15 }
   0x6   :  { %v25_v2 = vmul.f32 %v23_v0, %v23_v0  ;;  %v26_v3 = vmul.f32 %v24_v1, %v24_v1  ;;  %s36_s12 = sshll.u32 %s103_s11, 4  ;;  %s37_s12 = int_to_ptr.vmem [resolvable:$true] %s36_s12 }
   0x8   :  { %v27_v4 = vmul.f32 %v25_v2, %v23_v0  ;;  %v28_v5 = vmul.f32 %v26_v3, %v24_v1 }
   0xa   :  { %29 = vst [vmem:[#allocation5] sm:$0xff] %v27_v4 }
   0xb   :  { %30 = vst [vmem:[#allocation5 + $0x8] sm:$0xff] %v28_v5 }
   0xc   :  { %41 = dma.vmem_to_hbm [thread:$0]  %s37_s12, 256, %s39_s15, [#allocation4]  }
   0xd   :  { %100 = dma.done.wait [#allocation4], 256  }
   0xe   :  { %101 = vsyncadd [#allocation4], 4294967040 }
   0xf   :  { %46 = vsyncpa [#allocation3], 1 }
  0x10   :  { %47 = vsyncpa [#allocation4], 1 }

</bundles_post_ra>
